<compile_context>
chip_gen: v5e
topology: v5e:2x2
jax: 0.10.0
libtpu: 0.0.40
codegen_flags: <defaults>
</compile_context>

<pallas_src>
import functools
import math

import jax
import jax.numpy as jnp
from jax.experimental import pallas as pl
from jax.experimental.pallas import tpu as pltpu


def _largest_divisor_tile(n, candidates):
    for c in candidates:
        if n % c == 0:
            return c
    return n


def _vmem_limit_bytes(per_step_bytes):
    # double-buffered pipeline working set + headroom, clamped to a v7x-safe budget.
    want = 2 * per_step_bytes + 8 * 2**20
    return int(max(32 * 2**20, min(want, 40 * 2**20)))


# ----------------------------------------------------------------------------
# Kernel A: row-0 similarity logits (+ Gumbel noise), tiled over the column axis.
# Downstream only consumes argmax positions of the hard one-hot matrix; the global
# first-max lives in query row 0, so only sim[b, 0, :] + gumbel is ever needed.
# tau > 0 and the softmax are monotone and do not move the argmax.
# ----------------------------------------------------------------------------
def sim_row0_kernel(src0_ref, g_ref, tgt_ref, out_ref, *, inv_sqrt_c):
    # src0_ref: (1, C, 1)  g_ref: (1, 1, TN)  tgt_ref: (1, C, TN)  out_ref: (1, 1, TN)
    sim = jnp.sum(src0_ref[0] * tgt_ref[0], axis=0, keepdims=True)      # (1, TN) f32
    out_ref[0] = sim * inv_sqrt_c + g_ref[0]


def sim_row0_logits(src, tgt, gumbel):
    """Per-batch row-0 Gumbel logits (B, 1, N); argmax gives max_tgt_idx."""
    B, C, N = src.shape
    tn = _largest_divisor_tile(N, (4096, 2048, 1024, 512, 256, 128))
    nc = N // tn
    src0 = src[:, :, 0:1]                                               # (B, C, 1)
    kernel = functools.partial(sim_row0_kernel, inv_sqrt_c=1.0 / math.sqrt(C))
    per_step = C * tn * 4 + 2 * tn * 4 + C * 4
    return pl.pallas_call(
        kernel,
        out_shape=jax.ShapeDtypeStruct((B, 1, N), jnp.float32),
        grid_spec=pltpu.PrefetchScalarGridSpec(
            num_scalar_prefetch=0,
            grid=(B, nc),
            in_specs=[
                pl.BlockSpec((1, C, 1), lambda b, c: (b, 0, 0)),
                pl.BlockSpec((1, 1, tn), lambda b, c: (b, 0, c)),
                pl.BlockSpec((1, C, tn), lambda b, c: (b, 0, c)),
            ],
            out_specs=pl.BlockSpec((1, 1, tn), lambda b, c: (b, 0, c)),
        ),
        compiler_params=pltpu.CompilerParams(
            dimension_semantics=("parallel", "parallel"),
            vmem_limit_bytes=_vmem_limit_bytes(per_step),
        ),
    )(src0, gumbel, tgt)


# ----------------------------------------------------------------------------
# Kernel B pass 1: per-channel sum / sum-of-squares of y1 = w1 @ (x - point),
# accumulated over the (B, N) extent of one branch (src OR tgt).
# ----------------------------------------------------------------------------
def pe_stats_kernel(x_ref, pt_ref, w1_ref, sum_ref, sq_ref):
    @pl.when((pl.program_id(0) == 0) & (pl.program_id(1) == 0))
    def _():
        sum_ref[...] = jnp.zeros_like(sum_ref)
        sq_ref[...] = jnp.zeros_like(sq_ref)

    dist = x_ref[0] - pt_ref[0]                                          # (C, TN) f32
    y1 = jnp.dot(w1_ref[...], dist.astype(jnp.bfloat16),
                 preferred_element_type=jnp.float32)                     # (C, TN) f32
    sum_ref[...] += jnp.sum(y1, axis=-1, keepdims=True)
    sq_ref[...] += jnp.sum(y1 * y1, axis=-1, keepdims=True)


# ----------------------------------------------------------------------------
# Kernel B pass 2: recompute y1, apply BN (precomputed per-channel affine), ReLU,
# second 1x1 conv + bias, residual add; also emit dist.
# ----------------------------------------------------------------------------
def pe_apply_kernel(x_ref, pt_ref, w1_ref, scale_ref, shift_ref, w2_ref, b2_ref,
                    out_ref, dist_ref):
    x = x_ref[0]                                                         # (C, TN) f32
    dist = x - pt_ref[0]
    dist_ref[0] = dist
    y1 = jnp.dot(w1_ref[...], dist.astype(jnp.bfloat16),
                 preferred_element_type=jnp.float32)
    h = jnp.maximum(y1 * scale_ref[...] + shift_ref[...], 0.0)           # BN + ReLU
    y2 = jnp.dot(w2_ref[...], h.astype(jnp.bfloat16),
                 preferred_element_type=jnp.float32)
    out_ref[0] = x + y2 + b2_ref[...]


def pe_branch(x, point, w1_bf16, gamma, beta, w2_bf16, b2):
    """Shared-weight pe1 applied to one branch.  x: (B, C, N) f32, point: (B, C, 1) f32."""
    B, C, N = x.shape
    tn = _largest_divisor_tile(N, (8192, 4096, 2048, 1024, 512, 256, 128))
    nt = N // tn

    stats_step = C * tn * 4 + C * C * 2 + 4 * C * 4
    sums, sqs = pl.pallas_call(
        pe_stats_kernel,
        out_shape=(jax.ShapeDtypeStruct((C, 1), jnp.float32),
                   jax.ShapeDtypeStruct((C, 1), jnp.float32)),
        grid_spec=pltpu.PrefetchScalarGridSpec(
            num_scalar_prefetch=0,
            grid=(B, nt),
            in_specs=[
                pl.BlockSpec((1, C, tn), lambda b, t: (b, 0, t)),
                pl.BlockSpec((1, C, 1), lambda b, t: (b, 0, 0)),
                pl.BlockSpec((C, C), lambda b, t: (0, 0)),
            ],
            out_specs=(pl.BlockSpec((C, 1), lambda b, t: (0, 0)),
                       pl.BlockSpec((C, 1), lambda b, t: (0, 0))),
        ),
        compiler_params=pltpu.CompilerParams(
            dimension_semantics=("arbitrary", "arbitrary"),
            vmem_limit_bytes=_vmem_limit_bytes(stats_step),
        ),
    )(x, point, w1_bf16)

    # BatchNorm1d training-mode normalization (biased batch statistics), folded to affine.
    cnt = float(B * N)
    mean = sums / cnt                                                    # (C, 1)
    var = jnp.maximum(sqs / cnt - mean * mean, 0.0)
    scale = gamma * jax.lax.rsqrt(var + 1e-5)
    shift = beta - mean * scale

    apply_step = 3 * C * tn * 4 + 2 * C * C * 2 + 8 * C * 4
    out, dist = pl.pallas_call(
        pe_apply_kernel,
        out_shape=(jax.ShapeDtypeStruct((B, C, N), jnp.float32),
                   jax.ShapeDtypeStruct((B, C, N), jnp.float32)),
        grid_spec=pltpu.PrefetchScalarGridSpec(
            num_scalar_prefetch=0,
            grid=(B, nt),
            in_specs=[
                pl.BlockSpec((1, C, tn), lambda b, t: (b, 0, t)),
                pl.BlockSpec((1, C, 1), lambda b, t: (b, 0, 0)),
                pl.BlockSpec((C, C), lambda b, t: (0, 0)),
                pl.BlockSpec((C, 1), lambda b, t: (0, 0)),
                pl.BlockSpec((C, 1), lambda b, t: (0, 0)),
                pl.BlockSpec((C, C), lambda b, t: (0, 0)),
                pl.BlockSpec((C, 1), lambda b, t: (0, 0)),
            ],
            out_specs=(pl.BlockSpec((1, C, tn), lambda b, t: (b, 0, t)),
                       pl.BlockSpec((1, C, tn), lambda b, t: (b, 0, t))),
        ),
        compiler_params=pltpu.CompilerParams(
            dimension_semantics=("parallel", "parallel"),
            vmem_limit_bytes=_vmem_limit_bytes(apply_step),
        ),
    )(x, point, w1_bf16, scale, shift, w2_bf16, b2)
    return out, dist


# ----------------------------------------------------------------------------
# Full forward
# ----------------------------------------------------------------------------
def position_encode_origin_forward(src_embedding, tgt_embedding, tau_high, params,
                                   noise_key):
    B, C, N = src_embedding.shape
    # tau_high > 0 only rescales logits before a monotone softmax; the hard one-hot
    # positions (the only quantity consumed downstream) are unaffected.
    del tau_high

    gumbel = jax.random.gumbel(noise_key, (B, 1, N), dtype=jnp.float32)
    logits = sim_row0_logits(src_embedding, tgt_embedding, gumbel)        # (B, 1, N)

    # Global first-max of the row-wise one-hot hard matrix: row 0, column = row-0 argmax.
    cols = jnp.argmax(logits[:, 0, :], axis=-1).astype(jnp.int32)         # max_tgt_idx
    rows = jnp.zeros((B,), jnp.int32)                                     # max_src_idx

    src_point = jnp.take_along_axis(
        src_embedding, jnp.broadcast_to(rows[:, None, None], (B, C, 1)), axis=2)
    tgt_point = jnp.take_along_axis(
        tgt_embedding, jnp.broadcast_to(cols[:, None, None], (B, C, 1)), axis=2)

    w1, gamma, beta, w2, b2 = params
    w1_bf16 = w1.astype(jnp.bfloat16)
    w2_bf16 = w2.astype(jnp.bfloat16)

    src_out, src_dist = pe_branch(src_embedding, src_point, w1_bf16, gamma, beta,
                                  w2_bf16, b2)
    tgt_out, tgt_dist = pe_branch(tgt_embedding, tgt_point, w1_bf16, gamma, beta,
                                  w2_bf16, b2)
    return src_out, tgt_out, src_dist, tgt_dist


def init_params(key, C=64):
    k1, k2, k3 = jax.random.split(key, 3)
    # Conv1DBNReLU(64, 64, 1): conv weight (64, 64, 1), no bias -> (64, 64)
    w1 = jax.random.normal(k1, (C, C), dtype=jnp.float32) * (1.0 / math.sqrt(C))
    # BatchNorm1d(64): weight=1, bias=0 (PyTorch default init)
    gamma = jnp.ones((C, 1), dtype=jnp.float32)
    beta = jnp.zeros((C, 1), dtype=jnp.float32)
    # Conv1d(64, 64, 1) with bias
    w2 = jax.random.normal(k2, (C, C), dtype=jnp.float32) * (1.0 / math.sqrt(C))
    b2 = jax.random.normal(k3, (C, 1), dtype=jnp.float32) * 0.01
    return (w1, gamma, beta, w2, b2)


if __name__ == "__main__":
    B, C, N = 2, 64, 256   # pe1 fixes C = 64; N chosen lane-friendly and small
    key = jax.random.PRNGKey(0)
    k_src, k_tgt, k_par, k_noise = jax.random.split(key, 4)

    src_embedding = jax.random.normal(k_src, (B, C, N), dtype=jnp.float32)
    tgt_embedding = jax.random.normal(k_tgt, (B, C, N), dtype=jnp.float32)
    tau_high = 2.0
    params = init_params(k_par, C)

    outs = position_encode_origin_forward(
        src_embedding, tgt_embedding, tau_high, params, noise_key=k_noise)
    jax.block_until_ready(outs)

    src_out, tgt_out, src_dist, tgt_dist = outs
    assert src_out.shape == (B, C, N) and tgt_out.shape == (B, C, N)
    assert src_dist.shape == (B, C, N) and tgt_dist.shape == (B, C, N)
    assert bool(jnp.all(jnp.isfinite(src_out))) and bool(jnp.all(jnp.isfinite(tgt_out)))
    assert bool(jnp.all(jnp.isfinite(src_dist))) and bool(jnp.all(jnp.isfinite(tgt_dist)))
    print("KERNEL_OK")
</pallas_src>

<mosaic_0001>
module attributes {stable_mosaic.version = 11 : i64} {
  func.func @sim_row0_kernel(%arg0: i32, %arg1: i32, %arg2: memref<1x64x1xf32, #tpu.memory_space<vmem>>, %arg3: memref<1x1x256xf32, #tpu.memory_space<vmem>>, %arg4: memref<1x64x256xf32, #tpu.memory_space<vmem>>, %arg5: memref<1x1x256xf32, #tpu.memory_space<vmem>>) attributes {dimension_semantics = [#tpu.dimension_semantics<parallel>, #tpu.dimension_semantics<parallel>], iteration_bounds = array<i64: 2, 1>, scalar_prefetch = 0 : i64, scratch_operands = 0 : i64, tpu.core_type = #tpu.core_type<tc>, window_params = [{transform_indices = @transform_0, window_bounds = array<i64: 1, 64, 1>}, {transform_indices = @transform_1, window_bounds = array<i64: 1, 1, 256>}, {transform_indices = @transform_2, window_bounds = array<i64: 1, 64, 256>}, {transform_indices = @transform_3, window_bounds = array<i64: 1, 1, 256>}]} {
    %c0 = arith.constant 0 : index
    %c0_0 = arith.constant 0 : index
    %c0_1 = arith.constant 0 : index
    %0 = vector.load %arg2[%c0, %c0_0, %c0_1] : memref<1x64x1xf32, #tpu.memory_space<vmem>>, vector<1x64x1xf32>
    %1 = vector.shape_cast %0 : vector<1x64x1xf32> to vector<64x1xf32>
    %c0_2 = arith.constant 0 : index
    %c0_3 = arith.constant 0 : index
    %c0_4 = arith.constant 0 : index
    %2 = vector.load %arg4[%c0_2, %c0_3, %c0_4] : memref<1x64x256xf32, #tpu.memory_space<vmem>>, vector<1x64x256xf32>
    %3 = vector.shape_cast %2 : vector<1x64x256xf32> to vector<64x256xf32>
    %4 = vector.broadcast %1 : vector<64x1xf32> to vector<64x256xf32>
    %5 = arith.mulf %4, %3 : vector<64x256xf32>
    %cst = arith.constant dense<0.000000e+00> : vector<256xf32>
    %6 = vector.multi_reduction <add>, %5, %cst [0] : vector<64x256xf32> to vector<256xf32>
    %7 = vector.shape_cast %6 : vector<256xf32> to vector<1x256xf32>
    %cst_5 = arith.constant 1.250000e-01 : f32
    %8 = vector.broadcast %cst_5 : f32 to vector<1x256xf32>
    %9 = arith.mulf %7, %8 : vector<1x256xf32>
    %c0_6 = arith.constant 0 : index
    %c0_7 = arith.constant 0 : index
    %c0_8 = arith.constant 0 : index
    %10 = vector.load %arg3[%c0_6, %c0_7, %c0_8] : memref<1x1x256xf32, #tpu.memory_space<vmem>>, vector<1x1x256xf32>
    %11 = vector.shape_cast %10 : vector<1x1x256xf32> to vector<1x256xf32>
    %12 = arith.addf %9, %11 : vector<1x256xf32>
    %c0_9 = arith.constant 0 : index
    %c0_10 = arith.constant 0 : index
    %c0_11 = arith.constant 0 : index
    %13 = vector.load %arg5[%c0_9, %c0_10, %c0_11] : memref<1x1x256xf32, #tpu.memory_space<vmem>>, vector<1x1x256xf32>
    %14 = vector.shape_cast %13 : vector<1x1x256xf32> to vector<1x256xf32>
    %15 = vector.shape_cast %12 : vector<1x256xf32> to vector<1x1x256xf32>
    tpu.vector_store %arg5[%c0_9, %c0_10, %c0_11], %15 {strides = array<i32>} : memref<1x1x256xf32, #tpu.memory_space<vmem>>, vector<1x1x256xf32>,
    return
  }
  func.func @transform_0(%arg0: i32, %arg1: i32) -> (i32, i32, i32) {
    %c0_i32 = arith.constant 0 : i32
    %c0_i32_0 = arith.constant 0 : i32
    %c0_i32_1 = arith.constant 0 : i32
    return %arg0, %c0_i32, %c0_i32_0 : i32, i32, i32
  }
  func.func @transform_1(%arg0: i32, %arg1: i32) -> (i32, i32, i32) {
    %c0_i32 = arith.constant 0 : i32
    %c0_i32_0 = arith.constant 0 : i32
    return %arg0, %c0_i32, %arg1 : i32, i32, i32
  }
  func.func @transform_2(%arg0: i32, %arg1: i32) -> (i32, i32, i32) {
    %c0_i32 = arith.constant 0 : i32
    %c0_i32_0 = arith.constant 0 : i32
    return %arg0, %c0_i32, %arg1 : i32, i32, i32
  }
  func.func @transform_3(%arg0: i32, %arg1: i32) -> (i32, i32, i32) {
    %c0_i32 = arith.constant 0 : i32
    %c0_i32_0 = arith.constant 0 : i32
    return %arg0, %c0_i32, %arg1 : i32, i32, i32
  }
}

</mosaic_0001>

<bundles_post_ra>
// kernel: tpu_custom_call.1
= control target key start
LH: loop header
LB: loop body
LE: loop exit
PB: predicated region body
PF: predicated region fallthrough
CT: control target
= control target key end

     0   :  { %8 = vsyncpa [#allocation3], 0  ;;  %s894_s0 = inlined_call_operand.vmem [shape: f32[2,64,1], index: 0, kind: input, shape index: {}]   ;;  %s895_s1 = inlined_call_operand.vmem [shape: f32[2,1,256], index: 1, kind: input, shape index: {}]   ;;  %s896_s2 = inlined_call_operand.hbm [shape: f32[2,64,256], index: 2, kind: input, shape index: {}]   ;;  %s897_s3 = inlined_call_operand.hbm [shape: f32[2,1,256], index: 3, kind: output, shape index: {}]  }
   0x1   :  { %10 = vsyncpa [#allocation3 + $0x1], 0 }
   0x2   :  { %11 = vsyncpa [#allocation4], 0 }
   0x3   :  { %13 = vsyncpa [#allocation4 + $0x1], 0  ;;  %s743_s12 = smov 0   ;;  %s745_s13 = smov 0  }
   0x4   :  { %s747_s14 = smov 0   ;;  %s749_s15 = smov 0  }
   0x5   :  { %s751_s16 = smov 0   ;;  %s753_s17 = smov 0  }
   0x6 LB: > { %s519_s18 = sadd.s32 4294967295, %s718_s17   ;;  %s520_s19 = sadd.s32 4294967294, %s718_s17   ;;  %s718_s17 = sphi %s753_s17, %s19_s17   ;;  %s714_s16 = sphi %s751_s16, %s906_s16   ;;  %s710_s15 = sphi %s749_s15, %s905_s15   ;;  %s706_s14 = sphi %s747_s14, %s904_s14   ;;  %s702_s13 = sphi %s745_s13, %s903_s13   ;;  %s698_s12 = sphi %s743_s12, %s902_s12  }
   0x7   : > { %s31_s20 = sadd.s32 1, %s714_s16  ;;  %s94_s21 = sadd.s32 1, %s706_s14 }
   0x8   : > { %p33_p0 = scmp.ge.s32.totalorder %s31_s20, 2  ;;  %p101_p1 = scmp.ne.s32.totalorder %s706_s14, %s702_s13 }
   0x9   : > { %p102_p2 = scmp.eq.s32.totalorder %s718_s17, 0  ;;  %p107_p3 = scmp.ne.s32.totalorder %s702_s13, %s698_s12 }
   0xa   : > { %s908_s20 = smov (%p33_p0, %s31_s20), 0  ;;  %p108_p5 = scmp.eq.s32.totalorder %s519_s18, 0 }
   0xb   : > { %p784_p4 = por %p102_p2, %p101_p1  ;;  %s89_s23 = ssub.s32 %s714_s16, %s908_s20 }
   0xc   : > { %p133_p6 = scmp.eq.s32.totalorder %s519_s18, 1  ;;  %p92_p7 = scmp.eq.s32.totalorder %s89_s23, 0 }
   0xd   : > { %p790_p8 = por %p108_p5, %p107_p3  ;;  %p139_p10 = scmp.eq.s32.totalorder %s520_s19, 1 }
   0xe   : > { %p794_p9 = por %p133_p6, %p101_p1  ;;  %p522_p12 = scmp.ge.s32.totalorder %s718_s17, 2 }
   0xf   : > { %s799_s26 = scalar_select %p92_p7, %s706_s14, %s94_s21  }
  0x10   : > { %p801_p11 = por %p139_p10, %p107_p3  ;;  %p550_p13 = scmp.lt.s32.totalorder %s718_s17, 2 }
  0x11   : > { %s179_s28 = sand.u32 1, %s706_s14   ;;  %s536_s30 = sshll.u32 %s714_s16, 7 }
  0x12   : > { %s523_s29 = sshll.u32 %s179_s28, 7  ;;  %s190_s6 = scalar_lea.hbm %s896_s2, %s536_s30 }
  0x13   : > { %s183_s7 = scalar_lea.vmem [#allocation2], %s523_s29  ;;  %s191_s9 = sshll.u32 %s190_s6, 4  ;;  %s192_s9 = int_to_ptr.hbm [resolvable:$true] %s191_s9 }
  0x14   : > { %s193_s8 = sshll.u32 %s183_s7, 4  ;;  %p543_p0 = pnand %p550_p13, %p784_p4  ;;  %s194_s8 = int_to_ptr.vmem [resolvable:$true] %s193_s8 }
  0x15   : > { %p526_p1 = scmp.ge.s32.totalorder %s718_s17, 1  ;;  %s180_s10 = scalar_lea.sflag [#allocation3], %s179_s28 }
  0x16   : > { %s720_s11 = smov 256   ;;  %s721_s18 = smov 16  }
  0x17   : > { %545 = dma.hbm_to_vmem [thread:$0]  (!%p543_p0), %s192_s9, 2048, %s194_s8, %s180_s10, %s720_s11, %s720_s11, %s721_s18  }
  0x18   : > { %p201_p2 = scmp.lt.s32.totalorder %s718_s17, 3 }
  0x1a   : > { %p202_p3 = pnand %p526_p1, %p201_p2 }
  0x1b   : > { %s817_s19 = sand.u32 (!%p202_p3), 1, %s702_s13  }
  0x1c   : > { %205 = sbr.rel (%p202_p3) target bundleno = 202 (0xca), region = 32  ;;  %s527_s21 = sshll.u32 (!%p202_p3), %s817_s19, 7 }
  0x1d   : > { %s208_s23 = scalar_lea.sflag (!%p202_p3), [#allocation3], %s817_s19  ;;  %s821_s29 = scalar_lea.vmem (!%p202_p3), [#allocation2], %s527_s21 }
  0x21   : > { %689 = dma.done.wait (%p790_p8), %s208_s23, 2048  }
  0x22   : > { %691 = vsyncadd (%p790_p8), %s208_s23, 4294965248  ;;  %p248_p4 = scmp.lt.s32.totalorder %s710_s15, 1  ;;  %v722_v0 = vmov 0   ;;  %v272_v12 = vld [vmem:[%s821_s29] sm:$0xff]  ;;  %v273_v13 = vld [vmem:[%s821_s29 + $0x8] sm:$0xff]  ;;  %s528_s9 = sshll.u32 %s817_s19, 1 }
  0x23   : > { %604 = vset.pattern.permute.xlu1 %v722_v0  ;;  %603 = vset.pattern.permute.xlu0 %v722_v0  ;;  %v274_v14 = vld [vmem:[%s821_s29 + $0x10] sm:$0xff]  ;;  %v275_v15 = vld [vmem:[%s821_s29 + $0x18] sm:$0xff]  ;;  %v276_v16 = vld [vmem:[%s821_s29 + $0x20] sm:$0xff]  ;;  %s533_s10 = sshll.u32 %s710_s15, 1  ;;  %s247_s23 = scalar_lea.vmem [#allocation5], %s528_s9  ;;  %vm383_vm0 = vcmask 1040384  }
  0x24   : > { %s829_s22 = scalar_select %p248_p4, %s710_s15, 1  ;;  %605 = vset.pattern.permute.xlu2 %v722_v0  ;;  %v277_v17 = vld [vmem:[%s821_s29 + $0x28] sm:$0xff]  ;;  %v278_v24 = vld [vmem:[%s821_s29 + $0x30] sm:$0xff]  ;;  %v279_v25 = vld [vmem:[%s821_s29 + $0x38] sm:$0xff] }
  0x25   : > { %v280_v30 = vld [vmem:[%s821_s29 + $0x40] sm:$0xff]  ;;  %v281_v31 = vld [vmem:[%s821_s29 + $0x48] sm:$0xff]  ;;  %v282_v36 = vld [vmem:[%s821_s29 + $0x50] sm:$0xff]  ;;  %s404_s21 = scalar_lea.hbm %s897_s3, %s533_s10  ;;  %s392_s15 = scalar_lea.sflag [#allocation4], %s817_s19 }
  0x26   : > { %s537_s28 = sshll.u32 %s829_s22, 6  ;;  %v283_v37 = vld [vmem:[%s821_s29 + $0x58] sm:$0xff]  ;;  %v284_v43 = vld [vmem:[%s821_s29 + $0x60] sm:$0xff]  ;;  %v285_v44 = vld [vmem:[%s821_s29 + $0x68] sm:$0xff]  ;;  %s531_s24 = sshll.u32 %s829_s22, 1 }
  0x27   : > { %s252_s5 = scalar_lea.vmem %s894_s0, %s537_s28  ;;  %v286_v50 = vld [vmem:[%s821_s29 + $0x70] sm:$0xff]  ;;  %v287_v51 = vld [vmem:[%s821_s29 + $0x78] sm:$0xff]  ;;  %s260_s8 = scalar_lea.vmem %s895_s1, %s531_s24 }
  0x28   : > { %v266_v1 = vld [vmem:[%s252_s5 + $0x10] sm:$0xff]  ;;  %v264_v2 = vld [vmem:[%s252_s5] sm:$0xff]  ;;  %v267_v4 = vld [vmem:[%s252_s5 + $0x18] sm:$0xff]  ;;  %s406_s29 = sshll.u32 %s247_s23, 4  ;;  %s408_s22 = sshll.u32 %s404_s21, 4  ;;  %s407_s29 = int_to_ptr.vmem [resolvable:$true] %s406_s29  ;;  %s409_s22 = int_to_ptr.hbm [resolvable:$true] %s408_s22 }
  0x29   : > { %300 = vperm.xlu1 %604, %v266_v1   ;;  %290 = vperm.xlu0 %603, %v264_v2   ;;  %v268_v3 = vld [vmem:[%s252_s5 + $0x20] sm:$0xff]  ;;  %v265_v5 = vld [vmem:[%s252_s5 + $0x8] sm:$0xff]  ;;  %v271_v7 = vld [vmem:[%s252_s5 + $0x38] sm:$0xff]  ;;  %s650_s28 = sshra.s32 %s409_s22, 4  ;;  %s656_s24 = scalar_lea.hbm %s897_s3, 4  ;;  %s651_s28 = int_to_ptr.hbm [resolvable:$true] %s650_s28 }
  0x2a   : > { %310 = vperm.xlu2 %605, %v268_v3   ;;  %v269_v6 = vld [vmem:[%s252_s5 + $0x28] sm:$0xff]  ;;  %v270_v8 = vld [vmem:[%s252_s5 + $0x30] sm:$0xff]  ;;  %s652_s30 = scalar_lea.hbm %s651_s28, 2  ;;  %p657_p8 = scmp.lt.s32.totalorder %s651_s28, %s897_s3 }
  0x2b   : > { %p653_p5 = scmp.ne.s32.totalorder %s651_s28, %s652_s30  ;;  %p658_p10 = scmp.lt.s32.totalorder %s656_s24, %s652_s30 }
  0x2d   : > { %p654_p6 = pnand %p653_p5, %p794_p9  ;;  %p659_p13 = por %p658_p10, %p657_p8 }
  0x2f   : > { %p655_p7 = pneg %p654_p6 }
  0x31   : > { %305 = vperm.xlu1 %604, %v267_v4   ;;  %295 = vperm.xlu0 %603, %v265_v5   ;;  %p660_p0 = pnand %p659_p13, %p655_p7 }
  0x32   : > { %315 = vperm.xlu2 %605, %v269_v6  }
  0x39   : > { %325 = vperm.xlu1 %604, %v271_v7   ;;  %320 = vperm.xlu0 %603, %v270_v8   ;;  %v372_v7 = vld [vmem:[%s260_s8] sm:$0x3] }
  0x84   : > { %v311_v11 = vpop.permute.xlu2 %310 }
  0x85   : > { %v336_v39 = vmul.f32 %v311_v11, %v280_v30  ;;  %v337_v40 = vmul.f32 %v311_v11, %v281_v31 }
  0x8c   : > { %v316_v38 = vpop.permute.xlu2 %315 }
  0x8d   : > { %v338_v46 = vmul.f32 %v316_v38, %v282_v36  ;;  %v339_v47 = vmul.f32 %v316_v38, %v283_v37 }
  0x9b   : > { %v301_v9 = vpop.permute.xlu1 %300  ;;  %v291_v10 = vpop.permute.xlu0 %290 }
  0x9c   : > { %v328_v20 = vmul.f32 %v291_v10, %v272_v12  ;;  %v329_v21 = vmul.f32 %v291_v10, %v273_v13  ;;  %v332_v26 = vmul.f32 %v301_v9, %v276_v16  ;;  %v333_v27 = vmul.f32 %v301_v9, %v277_v17 }
  0x9d   : > { %v375_v10 = vperm.slane %v372_v7, 1  ;;  %v374_v13 = vperm.slane %v372_v7, 0  ;;  %v386_v16 = vlaneseq }
  0x9f   : > { %vm388_vm1 = vcmp.lt.s32.totalorder %v386_v16, 256 }
  0xa3   : > { %v306_v18 = vpop.permute.xlu1 %305  ;;  %v296_v19 = vpop.permute.xlu0 %295 }
  0xa4   : > { %v330_v22 = vmul.f32 %v296_v19, %v274_v14  ;;  %v331_v23 = vmul.f32 %v296_v19, %v275_v15  ;;  %v334_v32 = vmul.f32 %v306_v18, %v278_v24  ;;  %v335_v33 = vmul.f32 %v306_v18, %v279_v25 }
  0xa6   : > { %v344_v28 = vadd.f32 %v330_v22, %v328_v20  ;;  %v357_v29 = vadd.f32 %v331_v23, %v329_v21 }
  0xa8   : > { %v345_v34 = vadd.f32 %v344_v28, %v332_v26  ;;  %v358_v35 = vadd.f32 %v357_v29, %v333_v27 }
  0xaa   : > { %v346_v41 = vadd.f32 %v345_v34, %v334_v32  ;;  %v359_v42 = vadd.f32 %v358_v35, %v335_v33 }
  0xab   : > { %v321_v45 = vpop.permute.xlu0 %320  ;;  %v326_v52 = vpop.permute.xlu1 %325 }
  0xac   : > { %v347_v48 = vadd.f32 %v346_v41, %v336_v39  ;;  %v360_v49 = vadd.f32 %v359_v42, %v337_v40  ;;  %v340_v55 = vmul.f32 %v321_v45, %v284_v43  ;;  %v341_v56 = vmul.f32 %v321_v45, %v285_v44 }
  0xad   : > { %v342_v57 = vmul.f32 %v326_v52, %v286_v50  ;;  %v343_v58 = vmul.f32 %v326_v52, %v287_v51 }
  0xae   : > { %v348_v53 = vadd.f32 %v347_v48, %v338_v46  ;;  %v361_v54 = vadd.f32 %v360_v49, %v339_v47 }
  0xb0   : > { %v349_v59 = vadd.f32 %v348_v53, %v340_v55  ;;  %v362_v60 = vadd.f32 %v361_v54, %v341_v56 }
  0xb2   : > { %v350_v61 = vadd.f32 %v349_v59, %v342_v57  ;;  %v363_v62 = vadd.f32 %v362_v60, %v343_v58 }
  0xb4   : > { %v351_v63 = vrot.slane %v350_v61, 4  ;;  %v364_v0 = vrot.slane %v363_v62, 4 }
  0xb6   : > { %v352_v1 = vadd.f32 %v351_v63, %v350_v61  ;;  %v365_v2 = vadd.f32 %v364_v0, %v363_v62 }
  0xb8   : > { %v353_v3 = vrot.slane %v352_v1, 2  ;;  %v366_v4 = vrot.slane %v365_v2, 2 }
  0xba   : > { %v354_v5 = vadd.f32 %v353_v3, %v352_v1  ;;  %v367_v6 = vadd.f32 %v366_v4, %v365_v2 }
  0xbc   : > { %v355_v8 = vrot.slane %v354_v5, 1  ;;  %v368_v9 = vrot.slane %v367_v6, 1 }
  0xbe   : > { %v356_v11 = vadd.f32 %v355_v8, %v354_v5  ;;  %v369_v12 = vadd.f32 %v368_v9, %v367_v6 }
  0xc0   : > { %v370_v14 = vmul.f32 0.125, %v356_v11  ;;  %v371_v15 = vmul.f32 0.125, %v369_v12 }
  0xc2   : > { %v379_v17 = vadd.f32 %v375_v10, %v371_v15  ;;  %v378_v18 = vadd.f32 %v374_v13, %v370_v14 }
  0xc4   : > { %v382_v19 = vrot.slane %v379_v17, 7 }
  0xc6   : > { %v384_v20 = vsel %vm383_vm0, %v378_v18, %v382_v19 }
  0xc7   : > { %390 = vst.msk [vmem:[%s247_s23] sm:$0x3] %vm388_vm1, %v384_v20 }
  0xc8   : > { %663 = shalt.err (!%p660_p0)
}
  0xc9   : > { %540 = dma.vmem_to_hbm [thread:$0]  (%p794_p9), %s407_s29, 32, %s409_s22, %s392_s15  }
  0xca PF: > { %s420_s19 = sand.u32 1, %s698_s12   ;;  %p547_p1 = pnand %p522_p12, %p801_p11 }
  0xcb   : > { %s421_s8 = scalar_lea.sflag [#allocation4], %s420_s19 }
  0xcc   : > { %p548_p2 = pneg %p547_p1 }
  0xce   : > { %693 = dma.done.wait (%p548_p2), %s421_s8, 32  }
  0xcf   : > { %695 = vsyncadd (%p548_p2), %s421_s8, 4294967264  ;;  %s19_s17 = sadd.s32 1, %s718_s17   ;;  %s902_s12 = smov %s702_s13 }
  0xd0   : > { %p16_p3 = scmp.ge.s32.totalorder %s19_s17, 4   ;;  %s903_s13 = smov %s706_s14 }
  0xd1   : > { %s904_s14 = smov %s799_s26  ;;  %s905_s15 = smov %s714_s16 }
  0xd2   : > { %s906_s16 = smov %s908_s20  ;;  %18 = sbr.rel (!%p16_p3) target bundleno = 6 (0x6), region = 83 }
  0xd7   :  { %427 = vsyncpa [#allocation3], 1 }
  0xd8   :  { %429 = vsyncpa [#allocation3 + $0x1], 1 }
  0xd9   :  { %430 = vsyncpa [#allocation4], 1 }
  0xda   :  { %432 = vsyncpa [#allocation4 + $0x1], 1 }

</bundles_post_ra>
